<compile_context>
chip_gen: v7x
topology: tpu7x:2x2x1
jax: 0.10.0
libtpu: 0.0.40
codegen_flags: <defaults>
</compile_context>

<pallas_src>
import jax
import jax.numpy as jnp
from jax.experimental import pallas as pl
from jax.experimental.pallas import tpu as pltpu


_LANE = 128
_ROW_TARGET = 128              # row-tile target (wide & shallow per review)
_TILE_BYTES = 4 * 1024 * 1024  # per I/O tile budget: 4 tiles x 2 buffers = 32 MiB
_VMEM_LIMIT = 48 * 1024 * 1024


def _round_up(x, m):
    return ((x + m - 1) // m) * m


def _sublane(dtype):
    # dtype-dependent sublane packing: f32 -> 8, bf16/f16 -> 16, int8/fp8 -> 32
    return {4: 8, 2: 16, 1: 32}.get(jnp.dtype(dtype).itemsize, 8)


def _balanced_tile(dim, target, align):
    """Tile size <= target that is a multiple of `align` (or == dim, always legal),
    chosen so chunks are balanced (avoids a ~all-padding ragged last tile)."""
    if dim <= target:
        return dim                       # full dim: always a legal block size
    chunks = -(-dim // target)           # ceil
    return _round_up(-(-dim // chunks), align)


def _exchange_kernel(m1_ref, m2_ref, x0_ref, x1_ref, o1_ref, o2_ref):
    """One tile: gated exchange between the two modalities.

    Mask tiles are either (TR, 1) (per-row, main path) or (1, TL) (lane-dense,
    fallback path); jnp.where broadcasting handles both."""
    keep1 = m1_ref[...] != 0.0
    keep2 = m2_ref[...] != 0.0
    x0 = x0_ref[...]
    x1 = x1_ref[...]
    o1_ref[...] = jnp.where(keep1, x0, x1)
    o2_ref[...] = jnp.where(keep2, x1, x0)


def _launch(m1, m2, x0f, x1f, row_tile, col_tile, mask_block, mask_index_map):
    R, M = x0f.shape
    grid = (pl.cdiv(R, row_tile), pl.cdiv(M, col_tile))  # column axis innermost
    x_spec = pl.BlockSpec((row_tile, col_tile), lambda i, j: (i, j))
    m_spec = pl.BlockSpec(mask_block, mask_index_map)
    return pl.pallas_call(
        _exchange_kernel,
        out_shape=(
            jax.ShapeDtypeStruct((R, M), x0f.dtype),
            jax.ShapeDtypeStruct((R, M), x1f.dtype),
        ),
        grid_spec=pl.GridSpec(
            grid=grid,
            in_specs=[m_spec, m_spec, x_spec, x_spec],
            out_specs=[
                pl.BlockSpec((row_tile, col_tile), lambda i, j: (i, j)),
                pl.BlockSpec((row_tile, col_tile), lambda i, j: (i, j)),
            ],
        ),
        compiler_params=pltpu.CompilerParams(
            dimension_semantics=("parallel", "parallel"),
            vmem_limit_bytes=_VMEM_LIMIT,
        ),
    )(m1, m2, x0f, x1f)


@jax.jit
def exchange(x0, x1, bn1_weight, bn2_weight, bn_threshold):
    """Pallas implementation of Exchange.forward([x0, x1], bn, bn_threshold)."""
    assert x0.shape == x1.shape, "both modalities must share a shape"
    assert x0.dtype == x1.dtype, "both modalities must share a dtype"

    N, C = x0.shape[0], x0.shape[1]
    spatial = x0.shape[2:]
    M = 1
    for s in spatial:
        M *= s

    # Channel keep decisions, compared in the weights' native dtype (matches torch).
    keep1 = jnp.abs(bn1_weight) >= bn_threshold          # (C,) bool
    keep2 = jnp.abs(bn2_weight) >= bn_threshold          # (C,) bool

    itemsize = jnp.dtype(x0.dtype).itemsize
    sub = _sublane(x0.dtype)

    if M % _LANE == 0:
        # --- Main path: (N*C, M) slab, tiny per-row mask ---------------------
        R = N * C
        x0f = x0.reshape(R, M)
        x1f = x1.reshape(R, M)
        m1 = jnp.broadcast_to(keep1[None, :], (N, C)).reshape(R, 1).astype(jnp.float32)
        m2 = jnp.broadcast_to(keep2[None, :], (N, C)).reshape(R, 1).astype(jnp.float32)

        row_tile = _balanced_tile(R, _ROW_TARGET, sub)
        col_target = max(_LANE, (_TILE_BYTES // (row_tile * itemsize)) // _LANE * _LANE)
        col_tile = _balanced_tile(M, col_target, _LANE)

        # Mask index_map depends only on the row index -> its DMA is elided
        # across the inner (column) grid loop.
        o1f, o2f = _launch(m1, m2, x0f, x1f, row_tile, col_tile,
                           (row_tile, 1), lambda i, j: (i, 0))
    else:
        # --- Lane-dense fallback: (N, C*M) slab, (1, C*M) lane mask ----------
        L = C * M
        x0f = x0.reshape(N, L)
        x1f = x1.reshape(N, L)
        m1 = jnp.repeat(keep1.astype(jnp.float32), M).reshape(1, L)
        m2 = jnp.repeat(keep2.astype(jnp.float32), M).reshape(1, L)

        row_tile = _balanced_tile(N, _ROW_TARGET, sub)
        if L % _LANE == 0:
            col_target = max(_LANE, (_TILE_BYTES // (row_tile * itemsize)) // _LANE * _LANE)
            col_tile = _balanced_tile(L, col_target, _LANE)
        else:
            # Last dim not 128-aligned: the only legal block is the full extent.
            # TODO(synk): pad columns to a 128 multiple if C*prod(spatial) ever
            # becomes both misaligned and too large for a single VMEM tile.
            col_tile = L

        o1f, o2f = _launch(m1, m2, x0f, x1f, row_tile, col_tile,
                           (1, col_tile), lambda i, j: (0, j))

    out_shape = (N, C) + spatial
    return [o1f.reshape(out_shape), o2f.reshape(out_shape)]


def exchange_ref(x0, x1, bn1_weight, bn2_weight, bn_threshold):
    """Pure-JAX reference matching the PyTorch module."""
    ndim = x0.ndim
    shape = (1, x0.shape[1]) + (1,) * (ndim - 2)
    keep1 = (jnp.abs(bn1_weight) >= bn_threshold).reshape(shape)
    keep2 = (jnp.abs(bn2_weight) >= bn_threshold).reshape(shape)
    o1 = jnp.where(keep1, x0, x1)
    o2 = jnp.where(keep2, x1, x0)
    return [o1, o2]


def _run_case(key, shape, bn_threshold=0.5, dtype=jnp.float32):
    k0, k1, k2, k3 = jax.random.split(key, 4)
    C = shape[1]
    x0 = jax.random.normal(k0, shape, dtype=jnp.float32).astype(dtype)
    x1 = jax.random.normal(k1, shape, dtype=jnp.float32).astype(dtype)
    bn1_w = jax.random.normal(k2, (C,), dtype=jnp.float32)
    bn2_w = jax.random.normal(k3, (C,), dtype=jnp.float32)

    out = exchange(x0, x1, bn1_w, bn2_w, bn_threshold)
    jax.block_until_ready(out)

    ref = exchange_ref(x0, x1, bn1_w, bn2_w, bn_threshold)
    assert jnp.array_equal(out[0], ref[0]), f"x1 mismatch vs reference for {shape} {dtype}"
    assert jnp.array_equal(out[1], ref[1]), f"x2 mismatch vs reference for {shape} {dtype}"


if __name__ == "__main__":
    key = jax.random.PRNGKey(0)
    k_a, k_b, k_c, k_d = jax.random.split(key, 4)

    # 2D (NCHW) case, spatial size a multiple of 128 -> main (N*C, M) path.
    _run_case(k_a, (2, 4, 16, 16))
    # 3D (NCDHW) case, consistent with VNet / nn.BatchNorm3d usage.
    _run_case(k_b, (2, 4, 4, 8, 16))
    # Small / non-128-multiple spatial size -> lane-dense (N, C*M) fallback path.
    _run_case(k_c, (2, 4, 5, 5))
    # bf16 activations -> dtype-dependent sublane rounding path.
    _run_case(k_d, (2, 8, 16, 16), dtype=jnp.bfloat16)

    print("KERNEL_OK")
</pallas_src>

<mosaic_0001>
module attributes {stable_mosaic.version = 11 : i64} {
  func.func @_exchange_kernel(%arg0: i32, %arg1: i32, %arg2: memref<8x1xf32, #tpu.memory_space<vmem>>, %arg3: memref<8x1xf32, #tpu.memory_space<vmem>>, %arg4: memref<8x256xf32, #tpu.memory_space<vmem>>, %arg5: memref<8x256xf32, #tpu.memory_space<vmem>>, %arg6: memref<8x256xf32, #tpu.memory_space<vmem>>, %arg7: memref<8x256xf32, #tpu.memory_space<vmem>>) attributes {dimension_semantics = [#tpu.dimension_semantics<parallel>, #tpu.dimension_semantics<parallel>], iteration_bounds = array<i64: 1, 1>, scalar_prefetch = 0 : i64, scratch_operands = 0 : i64, tpu.core_type = #tpu.core_type<tc>, window_params = [{transform_indices = @transform_0, window_bounds = array<i64: 8, 1>}, {transform_indices = @transform_1, window_bounds = array<i64: 8, 1>}, {transform_indices = @transform_2, window_bounds = array<i64: 8, 256>}, {transform_indices = @transform_3, window_bounds = array<i64: 8, 256>}, {transform_indices = @transform_4, window_bounds = array<i64: 8, 256>}, {transform_indices = @transform_5, window_bounds = array<i64: 8, 256>}]} {
    %c0 = arith.constant 0 : index
    %c0_0 = arith.constant 0 : index
    %0 = vector.load %arg2[%c0, %c0_0] : memref<8x1xf32, #tpu.memory_space<vmem>>, vector<8x1xf32>
    %cst = arith.constant 0.000000e+00 : f32
    %1 = vector.broadcast %cst : f32 to vector<8x1xf32>
    %2 = arith.cmpf one, %0, %1 : vector<8x1xf32>
    %c0_1 = arith.constant 0 : index
    %c0_2 = arith.constant 0 : index
    %3 = vector.load %arg3[%c0_1, %c0_2] : memref<8x1xf32, #tpu.memory_space<vmem>>, vector<8x1xf32>
    %cst_3 = arith.constant 0.000000e+00 : f32
    %4 = vector.broadcast %cst_3 : f32 to vector<8x1xf32>
    %5 = arith.cmpf one, %3, %4 : vector<8x1xf32>
    %c0_4 = arith.constant 0 : index
    %c0_5 = arith.constant 0 : index
    %6 = vector.load %arg4[%c0_4, %c0_5] : memref<8x256xf32, #tpu.memory_space<vmem>>, vector<8x256xf32>
    %c0_6 = arith.constant 0 : index
    %c0_7 = arith.constant 0 : index
    %7 = vector.load %arg5[%c0_6, %c0_7] : memref<8x256xf32, #tpu.memory_space<vmem>>, vector<8x256xf32>
    %8 = vector.shape_cast %2 : vector<8x1xi1> to vector<8x1xi1>
    %9 = vector.broadcast %8 : vector<8x1xi1> to vector<8x256xi1>
    %10 = arith.select %9, %6, %7 : vector<8x256xi1>, vector<8x256xf32>
    %c0_8 = arith.constant 0 : index
    %c0_9 = arith.constant 0 : index
    %11 = vector.load %arg6[%c0_8, %c0_9] : memref<8x256xf32, #tpu.memory_space<vmem>>, vector<8x256xf32>
    tpu.vector_store %arg6[%c0_8, %c0_9], %10 {strides = array<i32>} : memref<8x256xf32, #tpu.memory_space<vmem>>, vector<8x256xf32>,
    %12 = vector.shape_cast %5 : vector<8x1xi1> to vector<8x1xi1>
    %13 = vector.broadcast %12 : vector<8x1xi1> to vector<8x256xi1>
    %14 = arith.select %13, %7, %6 : vector<8x256xi1>, vector<8x256xf32>
    %c0_10 = arith.constant 0 : index
    %c0_11 = arith.constant 0 : index
    %15 = vector.load %arg7[%c0_10, %c0_11] : memref<8x256xf32, #tpu.memory_space<vmem>>, vector<8x256xf32>
    tpu.vector_store %arg7[%c0_10, %c0_11], %14 {strides = array<i32>} : memref<8x256xf32, #tpu.memory_space<vmem>>, vector<8x256xf32>,
    return
  }
  func.func @transform_0(%arg0: i32, %arg1: i32) -> (i32, i32) {
    %c0_i32 = arith.constant 0 : i32
    %c0_i32_0 = arith.constant 0 : i32
    return %arg0, %c0_i32 : i32, i32
  }
  func.func @transform_1(%arg0: i32, %arg1: i32) -> (i32, i32) {
    %c0_i32 = arith.constant 0 : i32
    %c0_i32_0 = arith.constant 0 : i32
    return %arg0, %c0_i32 : i32, i32
  }
  func.func @transform_2(%arg0: i32, %arg1: i32) -> (i32, i32) {
    %c0_i32 = arith.constant 0 : i32
    return %arg0, %arg1 : i32, i32
  }
  func.func @transform_3(%arg0: i32, %arg1: i32) -> (i32, i32) {
    %c0_i32 = arith.constant 0 : i32
    return %arg0, %arg1 : i32, i32
  }
  func.func @transform_4(%arg0: i32, %arg1: i32) -> (i32, i32) {
    %c0_i32 = arith.constant 0 : i32
    return %arg0, %arg1 : i32, i32
  }
  func.func @transform_5(%arg0: i32, %arg1: i32) -> (i32, i32) {
    %c0_i32 = arith.constant 0 : i32
    return %arg0, %arg1 : i32, i32
  }
}

</mosaic_0001>

<bundles_post_ra>
// kernel: exchange.1
= control target key start
LH: loop header
LB: loop body
LE: loop exit
PB: predicated region body
PF: predicated region fallthrough
CT: control target
= control target key end

     0   :  { %v55_v0 = vmov 0   ;;  %s116_s0 = inlined_call_operand.vmem [shape: f32[8,1], index: 0, kind: input, shape index: {}]   ;;  %s117_s1 = inlined_call_operand.vmem [shape: f32[8,1], index: 1, kind: input, shape index: {}]   ;;  %s118_s2 = inlined_call_operand.vmem [shape: f32[8,256], index: 2, kind: input, shape index: {}]   ;;  %s119_s3 = inlined_call_operand.vmem [shape: f32[8,256], index: 3, kind: input, shape index: {}]   ;;  %s120_s4 = inlined_call_operand.vmem [shape: f32[8,256], index: 4, kind: output, shape index: {0}]   ;;  %s121_s5 = inlined_call_operand.vmem [shape: f32[8,256], index: 5, kind: output, shape index: {1}]  }
   0x1   :  { %54 = vset.pattern.permute.xlu0 %v55_v0  ;;  %v19_v1 = vld [vmem:[%s116_s0] sm:$0xff]  ;;  %v24_v6 = vld [vmem:[%s118_s2 + $0x8] sm:$0xff] }
   0x2   :  { %v21_v2 = vld [vmem:[%s117_s1] sm:$0xff]  ;;  %vm20_vm0 = vcmp.ne.f32.partialorder %v19_v1, 0.0  ;;  %v26_v8 = vld [vmem:[%s119_s3 + $0x8] sm:$0xff] }
   0x3   :  { %vm22_vm1 = vcmp.ne.f32.partialorder %v21_v2, 0.0  ;;  %v27_v3 = vsel %vm20_vm0, 1, %v55_v0  ;;  %v23_v5 = vld [vmem:[%s118_s2] sm:$0xff] }
   0x4   :  { %29 = vperm.xlu0 %54, %v27_v3   ;;  %v36_v4 = vsel %vm22_vm1, 1, %v55_v0  ;;  %v25_v7 = vld [vmem:[%s119_s3] sm:$0xff] }
   0x8   :  { %38 = vperm.xlu0 %54, %v36_v4  }
  0x83   :  { %v30_v9 = vpop.permute.xlu0 %29 }
  0x84   :  { %vm31_vm2 = vcmp.eq.s32.totalorder %v30_v9, 1 }
  0x85   :  { %v32_v10 = vsel %vm31_vm2, %v23_v5, %v25_v7  ;;  %v33_v11 = vsel %vm31_vm2, %v24_v6, %v26_v8 }
  0x86   :  { %34 = vst [vmem:[%s120_s4] sm:$0xff] %v32_v10  ;;  %35 = vst [vmem:[%s120_s4 + $0x8] sm:$0xff] %v33_v11 }
  0x87   :  { %v39_v12 = vpop.permute.xlu0 %38 }
  0x88   :  { %vm40_vm3 = vcmp.eq.s32.totalorder %v39_v12, 1 }
  0x89   :  { %v41_v13 = vsel %vm40_vm3, %v25_v7, %v23_v5  ;;  %v42_v14 = vsel %vm40_vm3, %v26_v8, %v24_v6 }
  0x8a   :  { %43 = vst [vmem:[%s121_s5] sm:$0xff] %v41_v13  ;;  %44 = vst [vmem:[%s121_s5 + $0x8] sm:$0xff] %v42_v14 }

</bundles_post_ra>
